<compile_context>
chip_gen: v5e
topology: v5e:2x2
jax: 0.10.0
libtpu: 0.0.40
codegen_flags: <defaults>
</compile_context>

<pallas_src>
import math

import jax
import jax.numpy as jnp
from jax.experimental import pallas as pl
from jax.experimental.pallas import tpu as pltpu


def _round_up(x: int, m: int) -> int:
    return ((x + m - 1) // m) * m


def _cdiv(a: int, b: int) -> int:
    return -(-a // b)


def mapper_kernel(x_ref, w0t_ref, b0_ref, w1t_ref, b1_ref, o_ref):
    # x_ref  : [rows, Fin]   activations (batch rows on sublanes, features on lanes)
    # w0t_ref: [Fin,  Fh]    layer-0 weight, pre-transposed (possibly block-diag packed), f32
    # b0_ref : [1,    Fh]    f32
    # w1t_ref: [Fh,   Fout]  layer-1 weight, pre-transposed, f32
    # b1_ref : [1,    Fout]  f32
    # o_ref  : [rows, Fout]
    x = x_ref[...].astype(jnp.float32)
    # Layer 0: Linear + ReLU (f32 accumulation on the MXU).
    h = jnp.dot(x, w0t_ref[...], preferred_element_type=jnp.float32)
    h = jnp.maximum(h + b0_ref[...], 0.0)
    # Layer 1: Linear (no activation); hidden stays f32 between the dots.
    y = jnp.dot(h, w1t_ref[...], preferred_element_type=jnp.float32) + b1_ref[...]
    o_ref[...] = y.astype(o_ref.dtype)


def _choose_block_rows(n_rows: int, row_bytes: int, target_bytes: int = 2 << 20) -> int:
    """Pick a batch-row tile: ~2 MiB blocks, multiple of 8, and >=2 grid steps
    whenever possible so the 'parallel' axis can shard across both v7x TCs."""
    if n_rows <= 16:
        return n_rows                      # single (full-extent) block
    blk = max(8, (target_bytes // row_bytes) // 8 * 8)
    blk = min(blk, _round_up(_cdiv(n_rows, 2), 8))   # guarantee >= 2 tiles
    blk = min(blk, _round_up(n_rows, 8))
    return int(blk)


def _run_fused_mlp(x2d, w0t, b0, w1t, b1):
    """x2d: [n_rows, Fin]; w0t: [Fin, Fh]; w1t: [Fh, Fout] -> [n_rows, Fout]."""
    n_rows, fin = x2d.shape
    fh = w0t.shape[1]
    fout = w1t.shape[1]
    act_it = jnp.dtype(x2d.dtype).itemsize

    blk = _choose_block_rows(n_rows, (fin + fout) * act_it)
    grid = (_cdiv(n_rows, blk),)

    w_bytes = (fin * fh + fh * fout + fh + fout) * 4
    vmem_needed = 2 * blk * (fin + fout) * act_it + 2 * w_bytes + (2 << 20)
    vmem_limit = int(min(56 << 20, max(32 << 20, vmem_needed)))

    cost = pl.CostEstimate(
        flops=2 * n_rows * (fin * fh + fh * fout),
        transcendentals=0,
        bytes_accessed=n_rows * (fin + fout) * act_it + w_bytes,
    )

    return pl.pallas_call(
        mapper_kernel,
        out_shape=jax.ShapeDtypeStruct((n_rows, fout), x2d.dtype),
        grid=grid,
        in_specs=[
            pl.BlockSpec((blk, fin), lambda i: (i, 0)),     # activations: tiled on batch rows
            pl.BlockSpec((fin, fh), lambda i: (0, 0)),      # weights/biases: VMEM-resident
            pl.BlockSpec((1, fh), lambda i: (0, 0)),
            pl.BlockSpec((fh, fout), lambda i: (0, 0)),
            pl.BlockSpec((1, fout), lambda i: (0, 0)),
        ],
        out_specs=pl.BlockSpec((blk, fout), lambda i: (i, 0)),
        compiler_params=pltpu.CompilerParams(
            dimension_semantics=("parallel",),
            vmem_limit_bytes=vmem_limit,
        ),
        cost_estimate=cost,
    )(x2d, w0t, b0, w1t, b1)


@jax.jit
def mapper_forward(x, w0, b0, w1, b1):
    """Fused 2-layer MLP: y = W1 @ relu(W0 @ x + b0) + b1, PyTorch nn.Linear layouts.

    x:  [B, d_in]
    w0: [d_h, d_in]   b0: [d_h]
    w1: [d_out, d_h]  b1: [d_out]
    returns [B, d_out] in x.dtype
    """
    B, d_in = x.shape
    d_h = w0.shape[0]
    d_out = w1.shape[0]
    f32 = jnp.float32

    # Lane-packing factor p: pack p batch rows per VMEM row so HBM-facing tiles
    # are full 128-lane dense.  The [B,d] <-> [B//p, p*d] reshapes are free
    # bitcasts for contiguous row-major arrays (no HBM pass).
    def _pack_needed(d):
        return 128 // math.gcd(128, d)

    pa, pb = _pack_needed(d_in), _pack_needed(d_out)
    p = (pa * pb) // math.gcd(pa, pb)  # lcm
    packable = (p > 1) and (B % p == 0) and (p * max(d_in, d_h, d_out) <= 512)

    if packable:
        eye = jnp.eye(p, dtype=f32)
        w0t = jnp.kron(eye, w0.T.astype(f32))          # [p*d_in, p*d_h] block-diagonal
        w1t = jnp.kron(eye, w1.T.astype(f32))          # [p*d_h, p*d_out]
        b0p = jnp.tile(b0.astype(f32), p)[None, :]     # [1, p*d_h]
        b1p = jnp.tile(b1.astype(f32), p)[None, :]     # [1, p*d_out]
        xp = x.reshape(B // p, p * d_in)               # free row-major bitcast
        yp = _run_fused_mlp(xp, w0t, b0p, w1t, b1p)
        return yp.reshape(B, d_out)                    # free row-major bitcast

    # Fallback: native [rows, d] tiles (no padding, no relayout); ragged last
    # tile is handled by Pallas' automatic block padding/masked writeback.
    w0t = w0.T.astype(f32)
    w1t = w1.T.astype(f32)
    b0r = b0.astype(f32)[None, :]
    b1r = b1.astype(f32)[None, :]
    return _run_fused_mlp(x, w0t, b0r, w1t, b1r)


def init_params(key, h_sizes=(16, 16, 16)):
    """Deterministic init matching nn.Linear (PyTorch [out, in] weight layout)."""
    params = []
    for k in range(len(h_sizes) - 1):
        fan_in, fan_out = h_sizes[k], h_sizes[k + 1]
        key, kw, kb = jax.random.split(key, 3)
        bound = 1.0 / jnp.sqrt(fan_in)
        w = jax.random.uniform(kw, (fan_out, fan_in), jnp.float32, -bound, bound)
        b = jax.random.uniform(kb, (fan_out,), jnp.float32, -bound, bound)
        params.append((w, b))
    return params


def mapper_ref(x, params):
    """Pure-JAX reference matching the PyTorch module."""
    for i, (w, b) in enumerate(params):
        x = x @ w.T + b
        if i != len(params) - 1:
            x = jnp.maximum(x, 0.0)
    return x


if __name__ == "__main__":
    key = jax.random.PRNGKey(0)
    key, kx = jax.random.split(key)

    B, D = 512, 16
    x = jax.random.normal(kx, (B, D), jnp.float32)

    params = init_params(key, (16, 16, 16))
    (w0, b0), (w1, b1) = params
    ref = mapper_ref(x, params)

    # --- packed lane-dense path (B % 8 == 0), multi-step grid ---
    out = jax.block_until_ready(mapper_forward(x, w0, b0, w1, b1))
    assert out.shape == (B, 16)
    assert jnp.allclose(out, ref, atol=1e-5, rtol=1e-5), "f32 packed-path mismatch"

    # --- ragged batch (B % 8 != 0): native-layout fallback, no padding copy ---
    x_odd = x[:301]
    out_odd = jax.block_until_ready(mapper_forward(x_odd, w0, b0, w1, b1))
    assert out_odd.shape == (301, 16)
    assert jnp.allclose(out_odd, ref[:301], atol=1e-5, rtol=1e-5), "ragged-batch mismatch"

    # --- bf16 activations (memory-bound fast path); f32 weights & accumulation ---
    x_bf = x.astype(jnp.bfloat16)
    out_bf = jax.block_until_ready(mapper_forward(x_bf, w0, b0, w1, b1))
    ref_bf = mapper_ref(x_bf.astype(jnp.float32), params)
    assert out_bf.dtype == jnp.bfloat16
    assert jnp.allclose(out_bf.astype(jnp.float32), ref_bf, atol=3e-2, rtol=3e-2), \
        "bf16 mismatch vs reference"

    print("KERNEL_OK")
</pallas_src>

<mosaic_0001>
module attributes {stable_mosaic.version = 11 : i64} {
  func.func @mapper_kernel(%arg0: i32, %arg1: memref<32x128xf32, #tpu.memory_space<vmem>>, %arg2: memref<128x128xf32, #tpu.memory_space<vmem>>, %arg3: memref<1x128xf32, #tpu.memory_space<vmem>>, %arg4: memref<128x128xf32, #tpu.memory_space<vmem>>, %arg5: memref<1x128xf32, #tpu.memory_space<vmem>>, %arg6: memref<32x128xf32, #tpu.memory_space<vmem>>) attributes {dimension_semantics = [#tpu.dimension_semantics<parallel>], iteration_bounds = array<i64: 2>, scalar_prefetch = 0 : i64, scratch_operands = 0 : i64, tpu.core_type = #tpu.core_type<tc>, window_params = [{transform_indices = @transform_0, window_bounds = array<i64: 32, 128>}, {pipeline_mode = #tpu.pipeline_mode<synchronous>, transform_indices = @transform_1, window_bounds = array<i64: 128, 128>}, {pipeline_mode = #tpu.pipeline_mode<synchronous>, transform_indices = @transform_2, window_bounds = array<i64: 1, 128>}, {pipeline_mode = #tpu.pipeline_mode<synchronous>, transform_indices = @transform_3, window_bounds = array<i64: 128, 128>}, {pipeline_mode = #tpu.pipeline_mode<synchronous>, transform_indices = @transform_4, window_bounds = array<i64: 1, 128>}, {transform_indices = @transform_5, window_bounds = array<i64: 32, 128>}]} {
    %c0 = arith.constant 0 : index
    %c0_0 = arith.constant 0 : index
    %0 = vector.load %arg1[%c0, %c0_0] : memref<32x128xf32, #tpu.memory_space<vmem>>, vector<32x128xf32>
    %c0_1 = arith.constant 0 : index
    %c0_2 = arith.constant 0 : index
    %1 = vector.load %arg2[%c0_1, %c0_2] : memref<128x128xf32, #tpu.memory_space<vmem>>, vector<128x128xf32>
    %cst = arith.constant dense<0.000000e+00> : vector<32x128xf32>
    %2 = tpu.matmul %0, %1, %cst {dimension_numbers = #tpu.dot_dimension_numbers<[1], [0], [0], [1], [0, 0, 1, 1], [], []>} : vector<32x128xf32>, vector<128x128xf32>, vector<32x128xf32> -> vector<32x128xf32>
    %c0_3 = arith.constant 0 : index
    %c0_4 = arith.constant 0 : index
    %3 = vector.load %arg3[%c0_3, %c0_4] : memref<1x128xf32, #tpu.memory_space<vmem>>, vector<1x128xf32>
    %4 = vector.broadcast %3 : vector<1x128xf32> to vector<32x128xf32>
    %5 = arith.addf %2, %4 : vector<32x128xf32>
    %cst_5 = arith.constant 0.000000e+00 : f32
    %6 = vector.broadcast %cst_5 : f32 to vector<32x128xf32>
    %7 = arith.maximumf %5, %6 : vector<32x128xf32>
    %c0_6 = arith.constant 0 : index
    %c0_7 = arith.constant 0 : index
    %8 = vector.load %arg4[%c0_6, %c0_7] : memref<128x128xf32, #tpu.memory_space<vmem>>, vector<128x128xf32>
    %cst_8 = arith.constant dense<0.000000e+00> : vector<32x128xf32>
    %9 = tpu.matmul %7, %8, %cst_8 {dimension_numbers = #tpu.dot_dimension_numbers<[1], [0], [0], [1], [0, 0, 1, 1], [], []>} : vector<32x128xf32>, vector<128x128xf32>, vector<32x128xf32> -> vector<32x128xf32>
    %c0_9 = arith.constant 0 : index
    %c0_10 = arith.constant 0 : index
    %10 = vector.load %arg5[%c0_9, %c0_10] : memref<1x128xf32, #tpu.memory_space<vmem>>, vector<1x128xf32>
    %11 = vector.broadcast %10 : vector<1x128xf32> to vector<32x128xf32>
    %12 = arith.addf %9, %11 : vector<32x128xf32>
    %c0_11 = arith.constant 0 : index
    %c0_12 = arith.constant 0 : index
    %13 = vector.load %arg6[%c0_11, %c0_12] : memref<32x128xf32, #tpu.memory_space<vmem>>, vector<32x128xf32>
    tpu.vector_store %arg6[%c0_11, %c0_12], %12 {strides = array<i32>} : memref<32x128xf32, #tpu.memory_space<vmem>>, vector<32x128xf32>,
    return
  }
  func.func @transform_0(%arg0: i32) -> (i32, i32) {
    %c0_i32 = arith.constant 0 : i32
    %c0_i32_0 = arith.constant 0 : i32
    return %arg0, %c0_i32 : i32, i32
  }
  func.func @transform_1(%arg0: i32) -> (i32, i32) {
    %c0_i32 = arith.constant 0 : i32
    %c0_i32_0 = arith.constant 0 : i32
    %c0_i32_1 = arith.constant 0 : i32
    return %c0_i32, %c0_i32_0 : i32, i32
  }
  func.func @transform_2(%arg0: i32) -> (i32, i32) {
    %c0_i32 = arith.constant 0 : i32
    %c0_i32_0 = arith.constant 0 : i32
    %c0_i32_1 = arith.constant 0 : i32
    return %c0_i32, %c0_i32_0 : i32, i32
  }
  func.func @transform_3(%arg0: i32) -> (i32, i32) {
    %c0_i32 = arith.constant 0 : i32
    %c0_i32_0 = arith.constant 0 : i32
    %c0_i32_1 = arith.constant 0 : i32
    return %c0_i32, %c0_i32_0 : i32, i32
  }
  func.func @transform_4(%arg0: i32) -> (i32, i32) {
    %c0_i32 = arith.constant 0 : i32
    %c0_i32_0 = arith.constant 0 : i32
    %c0_i32_1 = arith.constant 0 : i32
    return %c0_i32, %c0_i32_0 : i32, i32
  }
  func.func @transform_5(%arg0: i32) -> (i32, i32) {
    %c0_i32 = arith.constant 0 : i32
    %c0_i32_0 = arith.constant 0 : i32
    return %arg0, %c0_i32 : i32, i32
  }
}

</mosaic_0001>

<bundles_post_ra>
// kernel: tile.13
= control target key start
LH: loop header
LB: loop body
LE: loop exit
PB: predicated region body
PF: predicated region fallthrough
CT: control target
= control target key end

     0   :  { %s22_s0 = inlined_call_operand.vmem [shape: f32[16], index: 0, kind: input, shape index: {}]   ;;  %s23_s1 = inlined_call_operand.vmem [shape: f32[8,16], index: 1, kind: output, shape index: {}]  }
   0x1   :  { %v4_v0 = vld [vmem:[%s22_s0] ss:$0 sm:$0xff] }
   0x2   :  { %5 = vst [vmem:[%s23_s1] sm:$0xff] %v4_v0 }

// kernel: tile.14
= control target key start
LH: loop header
LB: loop body
LE: loop exit
PB: predicated region body
PF: predicated region fallthrough
CT: control target
= control target key end

     0   :  { %s67_s10 = smov 112   ;;  %s68_s11 = smov 80   ;;  %vm3_vm0 = vcmask 130048   ;;  %vm9_vm1 = vcmask 1048448   ;;  %vm15_vm2 = vcmask 917248   ;;  %vm21_vm3 = vcmask 786048   ;;  %s111_s0 = inlined_call_operand.vmem [shape: f32[8,16], index: 0, kind: input, shape index: {}]   ;;  %s112_s1 = inlined_call_operand.vmem [shape: f32[1,128], index: 1, kind: output, shape index: {}]  }
   0x1   :  { %v53_v0 = vld [vmem:[%s111_s0 + $0x7] sm:$0x1]   ;;  %v55_v1 = vld [vmem:[%s111_s0 + $0x5] sm:$0x1]   ;;  %v57_v2 = vld [vmem:[%s111_s0 + $0x3] sm:$0x1]  }
   0x2   :  { %7 = vrot.lane.b32.xlu0 %v53_v0, %s67_s10  ;;  %19 = vrot.lane.b32.xlu1 %v55_v1, %s68_s11  ;;  %s69_s14 = smov 48   ;;  %v54_v3 = vld [vmem:[%s111_s0 + $0x6] sm:$0x1]   ;;  %v56_v4 = vld [vmem:[%s111_s0 + $0x4] sm:$0x1]   ;;  %s70_s21 = smov 96  }
   0x3   :  { %31 = vrot.lane.b32.xlu2 %v57_v2, %s69_s14  ;;  %v58_v5 = vld [vmem:[%s111_s0 + $0x2] sm:$0x1]   ;;  %s71_s22 = smov 64   ;;  %s72_s23 = smov 32   ;;  %v59_v6 = vld [vmem:[%s111_s0 + $0x1] sm:$0x1]  }
   0x4   :  { %s73_s26 = smov 16   ;;  %v2_v7 = vld [vmem:[%s111_s0] sm:$0x1]   ;;  %vm27_vm4 = vcmask 654848   ;;  %vm33_vm5 = vcmask 523648   ;;  %vm39_vm6 = vcmask 392448  }
   0x5   :  { %4 = vst.msk [vmem:[#allocation0] sm:$0x1] %vm3_vm0, %v2_v7   ;;  %vm45_vm7 = vcmask 261248  }
   0xa   :  { %13 = vrot.lane.b32.xlu0 %v54_v3, %s70_s21  ;;  %25 = vrot.lane.b32.xlu1 %v56_v4, %s71_s22 }
   0xb   :  { %37 = vrot.lane.b32.xlu2 %v58_v5, %s72_s23 }
  0x12   :  { %43 = vrot.lane.b32.xlu0 %v59_v6, %s73_s26 }
  0x5d   :  { %v32_v8 = vpop.permute.xlu2 %31  }
  0x65   :  { %v38_v9 = vpop.permute.xlu2 %37  }
  0x74   :  { %v8_v10 = vpop.permute.xlu0 %7   ;;  %v20_v11 = vpop.permute.xlu1 %19  }
  0x75   :  { %10 = vst.msk [vmem:[#allocation0] sm:$0x1] %vm9_vm1, %v8_v10  }
  0x7c   :  { %v14_v12 = vpop.permute.xlu0 %13   ;;  %v26_v13 = vpop.permute.xlu1 %25  }
  0x7d   :  { %16 = vst.msk [vmem:[#allocation0] sm:$0x1] %vm15_vm2, %v14_v12  }
  0x7e   :  { %22 = vst.msk [vmem:[#allocation0] sm:$0x1] %vm21_vm3, %v20_v11  }
  0x7f   :  { %28 = vst.msk [vmem:[#allocation0] sm:$0x1] %vm27_vm4, %v26_v13  }
  0x80   :  { %34 = vst.msk [vmem:[#allocation0] sm:$0x1] %vm33_vm5, %v32_v8  }
  0x81   :  { %40 = vst.msk [vmem:[#allocation0] sm:$0x1] %vm39_vm6, %v38_v9  }
  0x84   :  { %v44_v14 = vpop.permute.xlu0 %43  }
  0x85   :  { %46 = vst.msk [vmem:[#allocation0] sm:$0x1] %vm45_vm7, %v44_v14  }
  0x8c   :  { %v49_v15 = vld [vmem:[#allocation0] sm:$0x1] }
  0x8d   :  { %52 = vst [vmem:[%s112_s1] sm:$0x1] %v49_v15 }

// kernel: mapper_forward.1
= control target key start
LH: loop header
LB: loop body
LE: loop exit
PB: predicated region body
PF: predicated region fallthrough
CT: control target
= control target key end

     0   :  { %s485_s18 = smov 0   ;;  %s613_s0 = inlined_call_operand.vmem [shape: f32[64,128], index: 0, kind: input, shape index: {}]   ;;  %s614_s1 = inlined_call_operand.vmem [shape: f32[128,128], index: 1, kind: input, shape index: {}]   ;;  %s615_s2 = inlined_call_operand.vmem [shape: f32[1,128], index: 2, kind: input, shape index: {}]   ;;  %s616_s3 = inlined_call_operand.vmem [shape: f32[128,128], index: 3, kind: input, shape index: {}]   ;;  %s617_s4 = inlined_call_operand.vmem [shape: f32[1,128], index: 4, kind: input, shape index: {}]   ;;  %s618_s5 = inlined_call_operand.vmem [shape: f32[64,128], index: 5, kind: output, shape index: {}]  }
   0x1 LB: > { %s394_s19 = sadd.s32 4294967295, %s453_s18   ;;  %p398_p0 = scmp.ge.s32.totalorder %s453_s18, 1  ;;  %s453_s18 = sphi %s485_s18, %s15_s18  }
   0x2   : > { %p188_p1 = scmp.lt.s32.totalorder %s453_s18, 3 }
   0x4   : > { %p189_p2 = pnand %p398_p0, %p188_p1 }
   0x5   : > { %s399_s17 = sshll.u32 (!%p189_p2), %s394_s19, 2 }
   0x6   : > { %192 = sbr.rel (%p189_p2) target bundleno = 322 (0x142), region = 40  ;;  %p217_p3 = scmp.lt.s32.totalorder (!%p189_p2), %s399_s17, 7 }
   0xb   : > { %v247_v0 = vld [vmem:[%s614_s1 + $0x78] sm:$0xff]  ;;  %v246_v1 = vld [vmem:[%s614_s1 + $0x70] sm:$0xff]  ;;  %v245_v2 = vld [vmem:[%s614_s1 + $0x68] sm:$0xff]  ;;  %s620_s17 = smov (!%p217_p3, %s399_s17), 7 }
   0xc   : > { %405 = vmatpush.msra.mxu2 %v247_v0  ;;  %252 = vmatpush.msra.mxu0 %v247_v0  ;;  %v244_v3 = vld [vmem:[%s614_s1 + $0x60] sm:$0xff]  ;;  %v243_v4 = vld [vmem:[%s614_s1 + $0x58] sm:$0xff]  ;;  %v242_v5 = vld [vmem:[%s614_s1 + $0x50] sm:$0xff]  ;;  %s400_s14 = sshll.u32 %s620_s17, 3 }
   0xd   : > { %v300_v6 = vld [vmem:[%s616_s3 + $0x78] sm:$0xff]  ;;  %v299_v7 = vld [vmem:[%s616_s3 + $0x70] sm:$0xff]  ;;  %v241_v8 = vld [vmem:[%s614_s1 + $0x48] sm:$0xff]  ;;  %s220_s27 = scalar_lea.vmem %s613_s0, %s400_s14  ;;  %s226_s26 = scalar_lea.vmem %s618_s5, %s400_s14 }
   0xe   : > { %406 = vmatpush.msra.mxu2 %v246_v1  ;;  %253 = vmatpush.msra.mxu0 %v246_v1  ;;  %v298_v9 = vld [vmem:[%s616_s3 + $0x68] sm:$0xff]  ;;  %v240_v10 = vld [vmem:[%s614_s1 + $0x40] sm:$0xff]  ;;  %v239_v12 = vld [vmem:[%s614_s1 + $0x38] sm:$0xff] }
   0xf   : > { %305 = vmatpush.msra.mxu1 %v300_v6  ;;  %421 = vmatpush.msra.mxu3 %v300_v6  ;;  %v297_v11 = vld [vmem:[%s616_s3 + $0x60] sm:$0xff]  ;;  %v296_v13 = vld [vmem:[%s616_s3 + $0x58] sm:$0xff]  ;;  %v238_v14 = vld [vmem:[%s614_s1 + $0x30] sm:$0xff] }
  0x10   : > { %407 = vmatpush.msra.mxu2 %v245_v2  ;;  %254 = vmatpush.msra.mxu0 %v245_v2  ;;  %v295_v15 = vld [vmem:[%s616_s3 + $0x50] sm:$0xff]  ;;  %v237_v16 = vld [vmem:[%s614_s1 + $0x28] sm:$0xff]  ;;  %v236_v18 = vld [vmem:[%s614_s1 + $0x20] sm:$0xff] }
  0x11   : > { %306 = vmatpush.msra.mxu1 %v299_v7  ;;  %422 = vmatpush.msra.mxu3 %v299_v7  ;;  %v294_v17 = vld [vmem:[%s616_s3 + $0x48] sm:$0xff]  ;;  %v293_v19 = vld [vmem:[%s616_s3 + $0x40] sm:$0xff]  ;;  %v235_v20 = vld [vmem:[%s614_s1 + $0x18] sm:$0xff] }
  0x12   : > { %408 = vmatpush.msra.mxu2 %v244_v3  ;;  %255 = vmatpush.msra.mxu0 %v244_v3  ;;  %v292_v21 = vld [vmem:[%s616_s3 + $0x38] sm:$0xff]  ;;  %v234_v22 = vld [vmem:[%s614_s1 + $0x10] sm:$0xff]  ;;  %v233_v24 = vld [vmem:[%s614_s1 + $0x8] sm:$0xff] }
  0x13   : > { %307 = vmatpush.msra.mxu1 %v298_v9  ;;  %423 = vmatpush.msra.mxu3 %v298_v9  ;;  %v291_v23 = vld [vmem:[%s616_s3 + $0x30] sm:$0xff]  ;;  %v290_v25 = vld [vmem:[%s616_s3 + $0x28] sm:$0xff]  ;;  %v232_v26 = vld [vmem:[%s614_s1] sm:$0xff] }
  0x14   : > { %409 = vmatpush.msra.mxu2 %v243_v4  ;;  %256 = vmatpush.msra.mxu0 %v243_v4  ;;  %v230_v27 = vld [vmem:[%s220_s27 + $0x10] sm:$0xff]  ;;  %v228_v28 = vld [vmem:[%s220_s27] sm:$0xff]  ;;  %v288_v30 = vld [vmem:[%s616_s3 + $0x18] sm:$0xff] }
  0x15   : > { %308 = vmatpush.msra.mxu1 %v297_v11  ;;  %424 = vmatpush.msra.mxu3 %v297_v11  ;;  %v289_v29 = vld [vmem:[%s616_s3 + $0x20] sm:$0xff]  ;;  %v231_v31 = vld [vmem:[%s220_s27 + $0x18] sm:$0xff]  ;;  %v229_v32 = vld [vmem:[%s220_s27 + $0x8] sm:$0xff] }
  0x16   : > { %410 = vmatpush.msra.mxu2 %v242_v5  ;;  %257 = vmatpush.msra.mxu0 %v242_v5  ;;  %v287_v33 = vld [vmem:[%s616_s3 + $0x10] sm:$0xff]  ;;  %v286_v34 = vld [vmem:[%s616_s3 + $0x8] sm:$0xff]  ;;  %v285_v35 = vld [vmem:[%s616_s3] sm:$0xff] }
  0x17   : > { %309 = vmatpush.msra.mxu1 %v296_v13  ;;  %425 = vmatpush.msra.mxu3 %v296_v13  ;;  %v445_v36 = vld [vmem:[%s615_s2] ss:$0 sm:$0xff] }
  0x18   : > { %411 = vmatpush.msra.mxu2 %v241_v8  ;;  %258 = vmatpush.msra.mxu0 %v241_v8  ;;  %v446_v49 = vld [vmem:[%s617_s4] ss:$0 sm:$0xff] }
  0x19   : > { %310 = vmatpush.msra.mxu1 %v295_v15  ;;  %426 = vmatpush.msra.mxu3 %v295_v15 }
  0x1a   : > { %412 = vmatpush.msra.mxu2 %v240_v10  ;;  %259 = vmatpush.msra.mxu0 %v240_v10 }
  0x1b   : > { %311 = vmatpush.msra.mxu1 %v294_v17  ;;  %427 = vmatpush.msra.mxu3 %v294_v17 }
  0x1c   : > { %413 = vmatpush.msra.mxu2 %v239_v12  ;;  %260 = vmatpush.msra.mxu0 %v239_v12 }
  0x1d   : > { %312 = vmatpush.msra.mxu1 %v293_v19  ;;  %428 = vmatpush.msra.mxu3 %v293_v19 }
  0x1e   : > { %414 = vmatpush.msra.mxu2 %v238_v14  ;;  %261 = vmatpush.msra.mxu0 %v238_v14 }
  0x1f   : > { %313 = vmatpush.msra.mxu1 %v292_v21  ;;  %429 = vmatpush.msra.mxu3 %v292_v21 }
  0x20   : > { %415 = vmatpush.msra.mxu2 %v237_v16  ;;  %262 = vmatpush.msra.mxu0 %v237_v16 }
  0x21   : > { %314 = vmatpush.msra.mxu1 %v291_v23  ;;  %430 = vmatpush.msra.mxu3 %v291_v23 }
  0x22   : > { %416 = vmatpush.msra.mxu2 %v236_v18  ;;  %263 = vmatpush.msra.mxu0 %v236_v18 }
  0x23   : > { %315 = vmatpush.msra.mxu1 %v290_v25  ;;  %431 = vmatpush.msra.mxu3 %v290_v25 }
  0x24   : > { %417 = vmatpush.msra.mxu2 %v235_v20  ;;  %264 = vmatpush.msra.mxu0 %v235_v20 }
  0x25   : > { %316 = vmatpush.msra.mxu1 %v289_v29  ;;  %432 = vmatpush.msra.mxu3 %v289_v29 }
  0x26   : > { %418 = vmatpush.msra.mxu2 %v234_v22  ;;  %265 = vmatpush.msra.mxu0 %v234_v22 }
  0x27   : > { %317 = vmatpush.msra.mxu1 %v288_v30  ;;  %433 = vmatpush.msra.mxu3 %v288_v30 }
  0x28   : > { %419 = vmatpush.msra.mxu2 %v233_v24  ;;  %266 = vmatpush.msra.mxu0 %v233_v24 }
  0x29   : > { %318 = vmatpush.msra.mxu1 %v287_v33  ;;  %434 = vmatpush.msra.mxu3 %v287_v33 }
  0x2a   : > { %420 = vmatpush.msra.mxu2 %v232_v26  ;;  %267 = vmatpush.msra.mxu0 %v232_v26 }
  0x2b   : > { %274 = vmatmul.f32.vlgmr.msra.gmra.mxu2 %v230_v27  ;;  %268 = vmatmul.f32.vlgmr.msra.gmra.mxu0 %v228_v28 }
  0x2c   : > { %319 = vmatpush.msra.mxu1 %v286_v34  ;;  %435 = vmatpush.msra.mxu3 %v286_v34 }
  0x2e   : > { %320 = vmatpush.msra.mxu1 %v285_v35  ;;  %436 = vmatpush.msra.mxu3 %v285_v35 }
  0x33   : > { %277 = vmatmul.f32.gmra.mxu2 %v231_v31  ;;  %271 = vmatmul.f32.gmra.mxu0 %v229_v32 }
  0xa8   : > { %v269_v37 = vpop.f32.mrf.mxu0 }
  0xa9   : > { %v270_v38 = vadd.f32 %v445_v36, %v269_v37 }
  0xab   : > { %v281_v39 = vmax.f32 %v270_v38, 0.0 }
  0xad   : > { %321 = vmatmul.f32.vlgmr.msra.gmra.mxu1 %v281_v39 }
  0xae   : > { %v275_v40 = vpop.f32.mrf.mxu2 }
  0xaf   : > { %v276_v41 = vadd.f32 %v445_v36, %v275_v40 }
  0xb0   : > { %v272_v42 = vpop.f32.mrf.mxu0 }
  0xb1   : > { %v283_v43 = vmax.f32 %v276_v41, 0.0  ;;  %v273_v44 = vadd.f32 %v445_v36, %v272_v42 }
  0xb3   : > { %v282_v45 = vmax.f32 %v273_v44, 0.0  ;;  %327 = vmatmul.f32.vlgmr.msra.gmra.mxu3 %v283_v43 }
  0xb5   : > { %324 = vmatmul.f32.gmra.mxu1 %v282_v45 }
  0xb6   : > { %v278_v46 = vpop.f32.mrf.mxu2 }
  0xb7   : > { %v279_v47 = vadd.f32 %v445_v36, %v278_v46 }
  0xb9   : > { %v284_v48 = vmax.f32 %v279_v47, 0.0 }
  0xbb   : > { %330 = vmatmul.f32.gmra.mxu3 %v284_v48 }
 0x12a   : > { %v322_v50 = vpop.f32.mrf.mxu1 }
 0x12b   : > { %v323_v51 = vadd.f32 %v446_v49, %v322_v50 }
 0x12d   : > { %334 = vst [vmem:[%s226_s26] sm:$0xff] %v323_v51 }
 0x132   : > { %v325_v52 = vpop.f32.mrf.mxu1 }
 0x133   : > { %v326_v53 = vadd.f32 %v446_v49, %v325_v52 }
 0x135   : > { %335 = vst [vmem:[%s226_s26 + $0x8] sm:$0xff] %v326_v53 }
 0x136   : > { %v328_v54 = vpop.f32.mrf.mxu3 }
 0x137   : > { %v329_v55 = vadd.f32 %v446_v49, %v328_v54 }
 0x139   : > { %336 = vst [vmem:[%s226_s26 + $0x10] sm:$0xff] %v329_v55 }
 0x13e   : > { %v331_v56 = vpop.f32.mrf.mxu3 }
 0x13f   : > { %v332_v57 = vadd.f32 %v446_v49, %v331_v56 }
 0x141   : > { %337 = vst [vmem:[%s226_s26 + $0x18] sm:$0xff] %v332_v57 }
 0x142 PF: > { %s15_s18 = sadd.s32 1, %s453_s18  }
 0x143   : > { %p12_p4 = scmp.ge.s32.totalorder %s15_s18, 4  }
 0x145   :  { %14 = sbr.rel (!%p12_p4) target bundleno = 1 (0x1), region = 70 }

</bundles_post_ra>
